<compile_context>
chip_gen: v6e
topology: v6e:2x2x1
jax: 0.10.0
libtpu: 0.0.40
codegen_flags: <defaults>
</compile_context>

<pallas_src>
import warnings

import jax
import jax.numpy as jnp
from jax.experimental import pallas as pl
from jax.experimental.pallas import tpu as pltpu

# Per-block VMEM budget.  4 buffers (in+out, double-buffered) * 4 MiB = 16 MiB,
# which fits under the explicit 24 MiB scoped-VMEM request on every generation
# (v5e/v6e physical 128 MiB, v7x physical 64 MiB).
_BLOCK_BYTES_CAP = 4 * 1024 * 1024
_VMEM_LIMIT_BYTES = 24 * 1024 * 1024


def _copy_kernel(x_ref, o_ref):
    """out[tile] = x[tile] -- straight VMEM copy of one tile."""
    o_ref[...] = x_ref[...]


def _identity_copy_impl(x2d, block_rows, alias):
    rows, lanes = x2d.shape
    grid = (pl.cdiv(rows, block_rows),)
    bytes_accessed = 2 * rows * lanes * jnp.dtype(x2d.dtype).itemsize
    alias_kwargs = {"input_output_aliases": {0: 0}} if alias else {}
    return pl.pallas_call(
        _copy_kernel,
        out_shape=jax.ShapeDtypeStruct((rows, lanes), x2d.dtype),
        grid=grid,
        in_specs=[pl.BlockSpec((block_rows, lanes), lambda i: (i, 0))],
        out_specs=pl.BlockSpec((block_rows, lanes), lambda i: (i, 0)),
        compiler_params=pltpu.CompilerParams(
            dimension_semantics=("parallel",),
            vmem_limit_bytes=_VMEM_LIMIT_BYTES,
        ),
        cost_estimate=pl.CostEstimate(
            flops=0, transcendentals=0, bytes_accessed=bytes_accessed
        ),
        **alias_kwargs,
    )(x2d)


# Non-donating (safe default) and donating (in-place, aliased) entry points.
_copy_jit = jax.jit(_identity_copy_impl, static_argnums=(1, 2))
_copy_donate_jit = jax.jit(
    _identity_copy_impl, static_argnums=(1, 2), donate_argnums=(0,)
)


def _round_up(n, m):
    return ((n + m - 1) // m) * m


def _plan_blocks(shape, dtype):
    """Pick a lane-dense 2D view (rows, lanes) and a size-driven block_rows."""
    itemsize = jnp.dtype(dtype).itemsize
    sub = max(8, 32 // itemsize)  # f32 -> 8, bf16 -> 16, int8/fp8 -> 32
    total = 1
    for s in shape:
        total *= s
    if total % 128 == 0:
        # Lane-dense slab: unmasked full-lane stores.
        rows, lanes = total // 128, 128
    elif len(shape) >= 2:
        # Fall back to (batch, feature): last dim equals the full array dim,
        # stores on the ragged 200-wide lane group are masked.
        lanes = shape[-1]
        rows = total // lanes
    else:
        rows, lanes = 1, total
    lanes_padded = _round_up(max(lanes, 1), 128)
    cap_rows = (_BLOCK_BYTES_CAP // (lanes_padded * itemsize)) // sub * sub
    cap_rows = max(sub, cap_rows)
    block_rows = min(cap_rows, _round_up(rows, sub))
    return rows, lanes, block_rows


class Text_AVG:
    """JAX/Pallas port of the PyTorch Text_AVG module (identity forward).

    use_pallas=False  -> return x directly (zero-cost identity, no launch).
    donate_input=True -> output buffer aliases the donated input buffer
                         (input_output_aliases={0: 0} + jit donation).
    """

    def __init__(self, name="avg", use_pallas=True, donate_input=False):
        self.name = name
        self.embedding_dim = 200
        self.use_pallas = use_pallas
        self.donate_input = donate_input

    def forward(self, x):
        # TODO(synk): the averaging itself happens upstream of this module in
        # the original pipeline; forward is intentionally a pass-through.
        x = jnp.asarray(x)
        if not self.use_pallas or x.ndim == 0 or x.size == 0:
            return x  # zero-cost identity; nothing to launch
        rows, lanes, block_rows = _plan_blocks(x.shape, x.dtype)
        x2d = x.reshape(rows, lanes)
        if self.donate_input:
            out2d = _copy_donate_jit(x2d, block_rows, True)
        else:
            out2d = _copy_jit(x2d, block_rows, False)
        return out2d.reshape(x.shape)

    def __call__(self, x):
        return self.forward(x)


if __name__ == "__main__":
    warnings.filterwarnings("ignore", message=".*donated.*")

    key = jax.random.PRNGKey(0)
    model = Text_AVG()

    # Case 1: B=8 -> 1600 elements, not a multiple of 128 -> masked 2D path.
    key, k1, k2 = jax.random.split(key, 3)
    x1 = jax.random.normal(k1, (8, model.embedding_dim), jnp.float32)
    out1 = jax.block_until_ready(model(x1))
    assert out1.shape == x1.shape, out1.shape
    assert out1.dtype == x1.dtype, out1.dtype
    assert jnp.array_equal(out1, x1), "mismatch vs identity reference (case 1)"

    # Case 2: B=16 -> 3200 = 25*128 -> lane-dense (rows, 128) path.
    x2 = jax.random.normal(k2, (16, model.embedding_dim), jnp.float32)
    out2 = jax.block_until_ready(model(x2))
    assert jnp.array_equal(out2, x2), "mismatch vs identity reference (case 2)"

    # Case 3: donated / aliased variant: output buffer is the donated input.
    model_inplace = Text_AVG(donate_input=True)
    x3 = jnp.copy(x2)
    x3_ref = jnp.copy(x3)  # keep a live copy for the check (x3 is consumed)
    out3 = jax.block_until_ready(model_inplace(x3))
    assert jnp.array_equal(out3, x3_ref), "mismatch vs identity reference (case 3)"

    print("KERNEL_OK")
</pallas_src>

<mosaic_0001>
module attributes {stable_mosaic.version = 11 : i64} {
  func.func @_copy_kernel(%arg0: i32, %arg1: memref<8x200xf32, #tpu.memory_space<vmem>>, %arg2: memref<8x200xf32, #tpu.memory_space<vmem>>) attributes {dimension_semantics = [#tpu.dimension_semantics<parallel>], iteration_bounds = array<i64: 1>, scalar_prefetch = 0 : i64, scratch_operands = 0 : i64, tpu.core_type = #tpu.core_type<tc>, window_params = [{transform_indices = @transform_0, window_bounds = array<i64: 8, 200>}, {transform_indices = @transform_1, window_bounds = array<i64: 8, 200>}]} {
    %c0 = arith.constant 0 : index
    %c0_0 = arith.constant 0 : index
    %0 = vector.load %arg1[%c0, %c0_0] : memref<8x200xf32, #tpu.memory_space<vmem>>, vector<8x200xf32>
    %c0_1 = arith.constant 0 : index
    %c0_2 = arith.constant 0 : index
    %1 = vector.load %arg2[%c0_1, %c0_2] : memref<8x200xf32, #tpu.memory_space<vmem>>, vector<8x200xf32>
    tpu.vector_store %arg2[%c0_1, %c0_2], %0 {strides = array<i32>} : memref<8x200xf32, #tpu.memory_space<vmem>>, vector<8x200xf32>,
    return
  }
  func.func @transform_0(%arg0: i32) -> (i32, i32) {
    %c0_i32 = arith.constant 0 : i32
    %c0_i32_0 = arith.constant 0 : i32
    return %arg0, %c0_i32 : i32, i32
  }
  func.func @transform_1(%arg0: i32) -> (i32, i32) {
    %c0_i32 = arith.constant 0 : i32
    %c0_i32_0 = arith.constant 0 : i32
    return %arg0, %c0_i32 : i32, i32
  }
}

</mosaic_0001>

<bundles_post_ra>
// kernel: _identity_copy_impl.1
= control target key start
LH: loop header
LB: loop body
LE: loop exit
PB: predicated region body
PF: predicated region fallthrough
CT: control target
= control target key end

     0   :  { %6 = vsyncpa [#allocation3], 0  ;;  %s105_s0 = inlined_call_operand.hbm [shape: f32[8,200], index: 0, kind: input, shape index: {}]   ;;  %s106_s1 = inlined_call_operand.hbm [shape: f32[8,200], index: 1, kind: output, shape index: {}]  }
   0x1   :  { %7 = vsyncpa [#allocation4], 0  ;;  %s87_s6 = smov [#allocation2]  }
   0x2   :  { %s14_s7 = sshll.u32 %s87_s6, 4  ;;  %s15_s7 = int_to_ptr.vmem [resolvable:$true] %s14_s7 }
   0x3   :  { %s51_s8 = scalar_lea.vmem %s15_s7, 256  ;;  %p56_p1 = scmp.lt.s32.totalorder %s15_s7, %s15_s7 }
   0x4   :  { %p52_p0 = scmp.ne.s32.totalorder %s15_s7, %s51_s8  ;;  %p57_p2 = scmp.lt.s32.totalorder %s51_s8, %s51_s8 }
   0x6   :  { %p58_p3 = por %p57_p2, %p56_p1 }
   0x8   :  { %p59_p4 = pnand %p58_p3, %p52_p0 }
   0xa   :  { %62 = shalt.err (!%p59_p4)
}
   0xb   :  { %17 = dma.hbm_to_vmem [thread:$0]  %s105_s0, 256, %s15_s7, [#allocation3]  }
   0xc   :  { %83 = dma.done.wait [#allocation3], 256  }
   0xd   :  { %84 = vsyncadd [#allocation3], 4294967040  ;;  %s88_s11 = smov [#allocation5]   ;;  %vm24_vm0 = vcmask 588800   ;;  %v21_v0 = vld [vmem:[#allocation2] sm:$0xff]  ;;  %v22_v1 = vld [vmem:[#allocation2 + $0x8] sm:$0xff] }
   0xe   :  { %s32_s12 = sshll.u32 %s88_s11, 4  ;;  %23 = vst [vmem:[#allocation5] sm:$0xff] %v21_v0  ;;  %25 = vst.msk [vmem:[#allocation5 + $0x8] sm:$0xff] %vm24_vm0, %v22_v1  ;;  %s33_s12 = int_to_ptr.vmem [resolvable:$true] %s32_s12 }
   0xf   :  { %s63_s13 = scalar_lea.vmem %s33_s12, 256  ;;  %p68_p6 = scmp.lt.s32.totalorder %s33_s12, %s33_s12 }
  0x10   :  { %p64_p5 = scmp.ne.s32.totalorder %s33_s12, %s63_s13  ;;  %p69_p7 = scmp.lt.s32.totalorder %s63_s13, %s63_s13 }
  0x12   :  { %p70_p8 = por %p69_p7, %p68_p6 }
  0x14   :  { %p71_p9 = pnand %p70_p8, %p64_p5 }
  0x16   :  { %74 = shalt.err (!%p71_p9)
}
  0x17   :  { %35 = dma.vmem_to_hbm [thread:$0]  %s33_s12, 256, %s106_s1, [#allocation4]  }
  0x18   :  { %85 = dma.done.wait [#allocation4], 256  }
  0x19   :  { %86 = vsyncadd [#allocation4], 4294967040 }
  0x1a   :  { %39 = vsyncpa [#allocation3], 1 }
  0x1b   :  { %40 = vsyncpa [#allocation4], 1 }

</bundles_post_ra>
